<compile_context>
chip_gen: v6e
topology: v6e:2x2x1
jax: 0.10.0
libtpu: 0.0.40
codegen_flags: <defaults>
</compile_context>

<pallas_src>
import functools

import jax
import jax.numpy as jnp
from jax import lax
from jax.experimental import pallas as pl
from jax.experimental.pallas import tpu as pltpu


def _round_up(n: int, m: int) -> int:
    return ((n + m - 1) // m) * m


def _vmem_capacity_bytes() -> int:
    """Best-effort trace-time VMEM capacity query (v7x: 64 MiB, v5e/v6e: 128 MiB)."""
    try:
        info = pltpu.get_tpu_info()
        for name in ("vmem_capacity_bytes", "vmem_size_bytes", "vmem_bytes"):
            v = getattr(info, name, None)
            if v:
                return int(v)
    except Exception:
        pass
    return 64 << 20  # v7x-safe fallback


def _matrix_scale_kernel(x_ref, w_ref, b_ref, o_ref, *, log_softmax, n_classes):
    x = x_ref[...]                                    # (tile, L), native dtype
    if log_softmax:
        xf = x.astype(jnp.float32)
        L = xf.shape[-1]
        segs = []
        # Exact per-class-segment log_softmax (one segment == one original row).
        # In the unpacked case L == n_classes and this loop runs once.
        for k in range(L // n_classes):
            seg = xf[:, k * n_classes:(k + 1) * n_classes]
            m = jnp.max(seg, axis=-1, keepdims=True)
            lse = m + jnp.log(jnp.sum(jnp.exp(seg - m), axis=-1, keepdims=True))
            segs.append(seg - lse)
        xf = segs[0] if len(segs) == 1 else jnp.concatenate(segs, axis=-1)
        x = xf.astype(x_ref.dtype)                    # back to native dtype for the MXU
    # x @ W.T (W is block-diagonal in the packed case), f32 accumulation.
    y = lax.dot_general(x, w_ref[...], (((1,), (1,)), ((), ())),
                        preferred_element_type=jnp.float32)
    y = y + b_ref[...].astype(jnp.float32)
    o_ref[...] = y.astype(o_ref.dtype)


def matrix_scale(x, weight, bias, *, dirichlet=False, batch_tile=None):
    """x: (B, C); weight: (C, C); bias: (C,). Returns (optional log_softmax(x)) @ W.T + b."""
    B, C = x.shape
    assert weight.shape == (C, C)
    assert bias.shape == (C,)
    out_dtype = x.dtype

    # --- lane-dense packing: put r = 128 // C logit rows into one 128-lane row ---
    pack = (C < 128) and (128 % C == 0) and (C >= 8)
    if pack:
        r = 128 // C
        B_pad = _round_up(B, r)
        if B_pad != B:                                # tiny pad (< r rows), only when needed
            x = jnp.pad(x, ((0, B_pad - B), (0, 0)))
        rows, L = B_pad // r, r * C
        x2 = x.reshape(rows, L)                                   # free (contiguous) reshape
        w2 = jnp.kron(jnp.eye(r, dtype=weight.dtype), weight)     # block-diag (L, L)
        b2 = jnp.tile(bias, r).reshape(1, L)
    else:
        r = 1
        rows, L = B, C
        x2, w2, b2 = x, weight, bias.reshape(1, C)

    # --- batch-tile sizing against this generation's VMEM ---
    itemsize = jnp.dtype(x.dtype).itemsize
    budget = int(_vmem_capacity_bytes() * 0.7)        # ~45 MiB v7x, ~90 MiB v5e/v6e
    if batch_tile is None:
        w_bytes = L * L * jnp.dtype(w2.dtype).itemsize
        # 2x double-buffered in-tile + 2x out-tile + ~3 tile-sized f32 temporaries.
        per_row = 4 * L * itemsize + 3 * L * 4
        batch_tile = max(8, (budget - 2 * w_bytes) // per_row)
    batch_tile = max(8, (int(batch_tile) // 8) * 8)
    if rows >= 8:
        batch_tile = min(batch_tile, (rows // 8) * 8)             # never exceed the array
        if rows > 8:                                              # keep >=2 grid steps (megacore)
            batch_tile = min(batch_tile, _round_up(pl.cdiv(rows, 2), 8))
    else:
        batch_tile = rows                                         # block == full (small) array

    grid = (pl.cdiv(rows, batch_tile),)                           # boundary block is masked

    kernel = functools.partial(_matrix_scale_kernel, log_softmax=dirichlet, n_classes=C)

    def _in_specs(buffered_consts):
        x_spec = pl.BlockSpec((batch_tile, L), lambda i: (i, 0))  # x tile (pipelined)
        if buffered_consts:
            w_spec = pl.BlockSpec((L, L), lambda i: (0, 0), pipeline_mode=pl.Buffered(1))
            b_spec = pl.BlockSpec((1, L), lambda i: (0, 0), pipeline_mode=pl.Buffered(1))
        else:
            w_spec = pl.BlockSpec((L, L), lambda i: (0, 0))
            b_spec = pl.BlockSpec((1, L), lambda i: (0, 0))
        return [x_spec, w_spec, b_spec]

    def _run(buffered_consts):
        return pl.pallas_call(
            kernel,
            out_shape=jax.ShapeDtypeStruct((rows, L), out_dtype),
            grid_spec=pltpu.PrefetchScalarGridSpec(
                num_scalar_prefetch=0,
                grid=grid,
                in_specs=_in_specs(buffered_consts),
                out_specs=pl.BlockSpec((batch_tile, L), lambda i: (i, 0)),
            ),
            compiler_params=pltpu.CompilerParams(
                dimension_semantics=("parallel",),    # batch axis -> megacore split on v7x
                vmem_limit_bytes=budget,
            ),
        )(x2, w2, b2)

    try:
        out = _run(True)       # constant W / bias blocks single-buffered (saves VMEM)
    except Exception:
        out = _run(False)      # fallback if pipeline_mode / Buffered(1) is unsupported

    if pack:
        out = out.reshape(rows * r, C)[:B]            # free reshape (+ slice only if padded)
    return out


def _ref(x, weight, bias, dirichlet):
    xf = x.astype(jnp.float32)
    if dirichlet:
        xf = jax.nn.log_softmax(xf, axis=-1)
    y = xf @ weight.astype(jnp.float32).T + bias.astype(jnp.float32)
    return y.astype(x.dtype)


if __name__ == "__main__":
    key = jax.random.PRNGKey(0)
    kx, kw, kb, kx2 = jax.random.split(key, 4)

    # --- packed (lane-dense) path: n_classes = 32 (128 % 32 == 0, r = 4) ---
    B, C = 8, 32
    x = jax.random.normal(kx, (B, C), dtype=jnp.float32)
    weight_init = jnp.eye(C, dtype=jnp.float32)       # module __init__ params: W=I, b=0
    bias_init = jnp.zeros((C,), dtype=jnp.float32)
    weight = weight_init + 0.05 * jax.random.normal(kw, (C, C), dtype=jnp.float32)
    bias = 0.1 * jax.random.normal(kb, (C,), dtype=jnp.float32)

    out_ms0 = matrix_scale(x, weight_init, bias_init, dirichlet=False)   # identity init
    out_ms = matrix_scale(x, weight, bias, dirichlet=False)              # matrix scaling
    out_dir = matrix_scale(x, weight, bias, dirichlet=True)              # dirichlet calibration
    jax.block_until_ready((out_ms0, out_ms, out_dir))

    assert jnp.allclose(out_ms0, _ref(x, weight_init, bias_init, False), atol=1e-5, rtol=1e-5)
    assert jnp.allclose(out_ms, _ref(x, weight, bias, False), atol=1e-5, rtol=1e-5)
    assert jnp.allclose(out_dir, _ref(x, weight, bias, True), atol=1e-5, rtol=1e-5)

    # Batch not a multiple of r=4: exercises the tiny pad + output slice.
    x_odd = jax.random.normal(kx2, (13, C), dtype=jnp.float32)
    out_odd = matrix_scale(x_odd, weight, bias, dirichlet=True)
    jax.block_until_ready(out_odd)
    assert jnp.allclose(out_odd, _ref(x_odd, weight, bias, True), atol=1e-5, rtol=1e-5)

    # Multi-step grid with a masked boundary block (250 packed rows -> 2 grid steps).
    x_big = jax.random.normal(kx, (1000, C), dtype=jnp.float32)
    out_big = matrix_scale(x_big, weight, bias, dirichlet=True)
    jax.block_until_ready(out_big)
    assert jnp.allclose(out_big, _ref(x_big, weight, bias, True), atol=1e-5, rtol=1e-5)

    # --- unpacked fallback path: n_classes = 48 (128 % 48 != 0) ---
    C2 = 48
    xb = jax.random.normal(kx, (13, C2), dtype=jnp.float32)
    wb = jnp.eye(C2, dtype=jnp.float32) + 0.05 * jax.random.normal(kw, (C2, C2), dtype=jnp.float32)
    bb = 0.1 * jax.random.normal(kb, (C2,), dtype=jnp.float32)
    out_u0 = matrix_scale(xb, wb, bb, dirichlet=False)
    out_u1 = matrix_scale(xb, wb, bb, dirichlet=True)
    jax.block_until_ready((out_u0, out_u1))
    assert jnp.allclose(out_u0, _ref(xb, wb, bb, False), atol=1e-5, rtol=1e-5)
    assert jnp.allclose(out_u1, _ref(xb, wb, bb, True), atol=1e-5, rtol=1e-5)

    print("KERNEL_OK")
</pallas_src>

<mosaic_0001>
module attributes {stable_mosaic.version = 11 : i64} {
  func.func @_matrix_scale_kernel(%arg0: i32, %arg1: memref<2x128xf32, #tpu.memory_space<vmem>>, %arg2: memref<128x128xf32, #tpu.memory_space<vmem>>, %arg3: memref<1x128xf32, #tpu.memory_space<vmem>>, %arg4: memref<2x128xf32, #tpu.memory_space<vmem>>) attributes {dimension_semantics = [#tpu.dimension_semantics<parallel>], iteration_bounds = array<i64: 1>, scalar_prefetch = 0 : i64, scratch_operands = 0 : i64, tpu.core_type = #tpu.core_type<tc>, window_params = [{transform_indices = @transform_0, window_bounds = array<i64: 2, 128>}, {pipeline_mode = #tpu.pipeline_mode<synchronous>, transform_indices = @transform_1, window_bounds = array<i64: 128, 128>}, {pipeline_mode = #tpu.pipeline_mode<synchronous>, transform_indices = @transform_2, window_bounds = array<i64: 1, 128>}, {transform_indices = @transform_3, window_bounds = array<i64: 2, 128>}]} {
    %c0 = arith.constant 0 : index
    %c0_0 = arith.constant 0 : index
    %0 = vector.load %arg1[%c0, %c0_0] : memref<2x128xf32, #tpu.memory_space<vmem>>, vector<2x128xf32>
    %c0_1 = arith.constant 0 : index
    %c0_2 = arith.constant 0 : index
    %1 = vector.load %arg2[%c0_1, %c0_2] : memref<128x128xf32, #tpu.memory_space<vmem>>, vector<128x128xf32>
    %cst = arith.constant dense<0.000000e+00> : vector<2x128xf32>
    %2 = tpu.matmul %0, %1, %cst {dimension_numbers = #tpu.dot_dimension_numbers<[1], [1], [0], [0], [0, 0, 1, 0], [], []>} : vector<2x128xf32>, vector<128x128xf32>, vector<2x128xf32> -> vector<2x128xf32>
    %c0_3 = arith.constant 0 : index
    %c0_4 = arith.constant 0 : index
    %3 = vector.load %arg3[%c0_3, %c0_4] : memref<1x128xf32, #tpu.memory_space<vmem>>, vector<1x128xf32>
    %4 = vector.broadcast %3 : vector<1x128xf32> to vector<2x128xf32>
    %5 = arith.addf %2, %4 : vector<2x128xf32>
    %c0_5 = arith.constant 0 : index
    %c0_6 = arith.constant 0 : index
    %6 = vector.load %arg4[%c0_5, %c0_6] : memref<2x128xf32, #tpu.memory_space<vmem>>, vector<2x128xf32>
    tpu.vector_store %arg4[%c0_5, %c0_6], %5 {strides = array<i32>} : memref<2x128xf32, #tpu.memory_space<vmem>>, vector<2x128xf32>,
    return
  }
  func.func @transform_0(%arg0: i32) -> (i32, i32) {
    %c0_i32 = arith.constant 0 : i32
    %c0_i32_0 = arith.constant 0 : i32
    return %arg0, %c0_i32 : i32, i32
  }
  func.func @transform_1(%arg0: i32) -> (i32, i32) {
    %c0_i32 = arith.constant 0 : i32
    %c0_i32_0 = arith.constant 0 : i32
    %c0_i32_1 = arith.constant 0 : i32
    return %c0_i32, %c0_i32_0 : i32, i32
  }
  func.func @transform_2(%arg0: i32) -> (i32, i32) {
    %c0_i32 = arith.constant 0 : i32
    %c0_i32_0 = arith.constant 0 : i32
    %c0_i32_1 = arith.constant 0 : i32
    return %c0_i32, %c0_i32_0 : i32, i32
  }
  func.func @transform_3(%arg0: i32) -> (i32, i32) {
    %c0_i32 = arith.constant 0 : i32
    %c0_i32_0 = arith.constant 0 : i32
    return %arg0, %c0_i32 : i32, i32
  }
}

module attributes {stable_mosaic.version = 11 : i64} {
  func.func @_matrix_scale_kernel(%arg0: i32, %arg1: memref<2x128xf32, #tpu.memory_space<vmem>>, %arg2: memref<128x128xf32, #tpu.memory_space<vmem>>, %arg3: memref<1x128xf32, #tpu.memory_space<vmem>>, %arg4: memref<2x128xf32, #tpu.memory_space<vmem>>) attributes {dimension_semantics = [#tpu.dimension_semantics<parallel>], iteration_bounds = array<i64: 1>, scalar_prefetch = 0 : i64, scratch_operands = 0 : i64, tpu.core_type = #tpu.core_type<tc>, window_params = [{transform_indices = @transform_0, window_bounds = array<i64: 2, 128>}, {pipeline_mode = #tpu.pipeline_mode<synchronous>, transform_indices = @transform_1, window_bounds = array<i64: 128, 128>}, {pipeline_mode = #tpu.pipeline_mode<synchronous>, transform_indices = @transform_2, window_bounds = array<i64: 1, 128>}, {transform_indices = @transform_3, window_bounds = array<i64: 2, 128>}]} {
    %c0 = arith.constant 0 : index
    %c0_0 = arith.constant 0 : index
    %0 = vector.load %arg1[%c0, %c0_0] : memref<2x128xf32, #tpu.memory_space<vmem>>, vector<2x128xf32>
    %c0_1 = arith.constant 0 : index
    %c0_2 = arith.constant 0 : index
    %1 = vector.load %arg2[%c0_1, %c0_2] : memref<128x128xf32, #tpu.memory_space<vmem>>, vector<128x128xf32>
    %cst = arith.constant dense<0.000000e+00> : vector<2x128xf32>
    %2 = tpu.matmul %0, %1, %cst {dimension_numbers = #tpu.dot_dimension_numbers<[1], [1], [0], [0], [0, 0, 1, 0], [], []>} : vector<2x128xf32>, vector<128x128xf32>, vector<2x128xf32> -> vector<2x128xf32>
    %c0_3 = arith.constant 0 : index
    %c0_4 = arith.constant 0 : index
    %3 = vector.load %arg3[%c0_3, %c0_4] : memref<1x128xf32, #tpu.memory_space<vmem>>, vector<1x128xf32>
    %4 = vector.broadcast %3 : vector<1x128xf32> to vector<2x128xf32>
    %5 = arith.addf %2, %4 : vector<2x128xf32>
    %c0_5 = arith.constant 0 : index
    %c0_6 = arith.constant 0 : index
    %6 = vector.load %arg4[%c0_5, %c0_6] : memref<2x128xf32, #tpu.memory_space<vmem>>, vector<2x128xf32>
    tpu.vector_store %arg4[%c0_5, %c0_6], %5 {strides = array<i32>} : memref<2x128xf32, #tpu.memory_space<vmem>>, vector<2x128xf32>,
    return
  }
  func.func @transform_0(%arg0: i32) -> (i32, i32) {
    %c0_i32 = arith.constant 0 : i32
    %c0_i32_0 = arith.constant 0 : i32
    return %arg0, %c0_i32 : i32, i32
  }
  func.func @transform_1(%arg0: i32) -> (i32, i32) {
    %c0_i32 = arith.constant 0 : i32
    %c0_i32_0 = arith.constant 0 : i32
    %c0_i32_1 = arith.constant 0 : i32
    return %c0_i32, %c0_i32_0 : i32, i32
  }
  func.func @transform_2(%arg0: i32) -> (i32, i32) {
    %c0_i32 = arith.constant 0 : i32
    %c0_i32_0 = arith.constant 0 : i32
    %c0_i32_1 = arith.constant 0 : i32
    return %c0_i32, %c0_i32_0 : i32, i32
  }
  func.func @transform_3(%arg0: i32) -> (i32, i32) {
    %c0_i32 = arith.constant 0 : i32
    %c0_i32_0 = arith.constant 0 : i32
    return %arg0, %c0_i32 : i32, i32
  }
}

</mosaic_0001>

<bundles_post_ra>
// kernel: tpu_custom_call.1
= control target key start
LH: loop header
LB: loop body
LE: loop exit
PB: predicated region body
PF: predicated region fallthrough
CT: control target
= control target key end

     0   :  { %8 = vsyncpa [#allocation3], 0  ;;  %s317_s0 = inlined_call_operand.hbm [shape: f32[2,128], index: 0, kind: input, shape index: {}]   ;;  %s318_s1 = inlined_call_operand.hbm [shape: f32[128,128], index: 1, kind: input, shape index: {}]   ;;  %s319_s2 = inlined_call_operand.vmem [shape: f32[1,128], index: 2, kind: input, shape index: {}]   ;;  %s320_s3 = inlined_call_operand.hbm [shape: f32[2,128], index: 3, kind: output, shape index: {}]  }
   0x1   :  { %9 = vsyncpa [#allocation6], 0 }
   0x2   :  { %10 = vsyncpa [#allocation4], 0  ;;  %s278_s12 = smov [#allocation2]   ;;  %s279_s14 = smov [#allocation5]  }
   0x3   :  { %s17_s13 = sshll.u32 %s278_s12, 4  ;;  %s26_s15 = sshll.u32 %s279_s14, 4  ;;  %s18_s13 = int_to_ptr.vmem [resolvable:$true] %s17_s13  ;;  %s27_s15 = int_to_ptr.vmem [resolvable:$true] %s26_s15 }
   0x4   :  { %s220_s16 = scalar_lea.vmem %s18_s13, 32  ;;  %p225_p1 = scmp.lt.s32.totalorder %s18_s13, %s18_s13 }
   0x5   :  { %p221_p0 = scmp.ne.s32.totalorder %s18_s13, %s220_s16  ;;  %p226_p2 = scmp.lt.s32.totalorder %s220_s16, %s220_s16 }
   0x7   :  { %p227_p3 = por %p226_p2, %p225_p1 }
   0x9   :  { %p228_p4 = pnand %p227_p3, %p221_p0 }
   0xb   :  { %231 = shalt.err (!%p228_p4)
}
   0xc   :  { %20 = dma.hbm_to_vmem [thread:$0]  %s317_s0, 32, %s18_s13, [#allocation3]  }
   0xd   :  { %s240_s19 = scalar_lea.vmem %s27_s15, 2048  ;;  %p245_p6 = scmp.lt.s32.totalorder %s27_s15, %s27_s15 }
   0xe   :  { %p241_p5 = scmp.ne.s32.totalorder %s27_s15, %s240_s19  ;;  %p246_p7 = scmp.lt.s32.totalorder %s240_s19, %s240_s19 }
  0x10   :  { %p247_p8 = por %p246_p7, %p245_p6 }
  0x12   :  { %p248_p9 = pnand %p247_p8, %p241_p5 }
  0x14   :  { %251 = shalt.err (!%p248_p9)
}
  0x15   :  { %s280_s20 = smov 128   ;;  %s281_s21 = smov 8  }
  0x16   :  { %32 = dma.hbm_to_vmem [thread:$0]  %s318_s1, 2048, %s27_s15, [#allocation6], %s280_s20, %s280_s20, %s281_s21  }
  0x17   :  { %272 = dma.done.wait [#allocation3], 32  }
  0x18   :  { %273 = vsyncadd [#allocation3], 4294967264 }
  0x19   :  { %274 = dma.done.wait [#allocation6], 2048  }
  0x1a   :  { %275 = vsyncadd [#allocation6], 4294965248  ;;  %v282_v0 = vmov 0.0   ;;  %vm283_vm0 = vmmov 0   ;;  %v57_v1 = vld [vmem:[#allocation5 + $0x78] sm:$0xff]  ;;  %v56_v2 = vld [vmem:[#allocation5 + $0x70] sm:$0xff] }
  0x1b   :  { %170 = vmatprep.subr.mxu0 %v282_v0  ;;  %202 = vmatprep.mubr.msk.f32.mxu0 %vm283_vm0, %v282_v0  ;;  %v55_v3 = vld [vmem:[#allocation5 + $0x68] sm:$0xff]  ;;  %v54_v4 = vld [vmem:[#allocation5 + $0x60] sm:$0xff]  ;;  %v53_v5 = vld [vmem:[#allocation5 + $0x58] sm:$0xff]  ;;  %s284_s24 = smov [#allocation7]  }
  0x1c   :  { %171 = vmatpush3.xpose.msra.mxu0 %v57_v1  ;;  %v52_v6 = vld [vmem:[#allocation5 + $0x50] sm:$0xff]  ;;  %v51_v7 = vld [vmem:[#allocation5 + $0x48] sm:$0xff]  ;;  %v50_v8 = vld [vmem:[#allocation5 + $0x40] sm:$0xff]  ;;  %s142_s25 = sshll.u32 %s284_s24, 4  ;;  %s143_s25 = int_to_ptr.vmem [resolvable:$true] %s142_s25 }
  0x1d   :  { %172 = vmatprep.subr.mxu0 %v282_v0  ;;  %v49_v9 = vld [vmem:[#allocation5 + $0x38] sm:$0xff]  ;;  %v48_v10 = vld [vmem:[#allocation5 + $0x30] sm:$0xff]  ;;  %v47_v11 = vld [vmem:[#allocation5 + $0x28] sm:$0xff]  ;;  %s252_s26 = scalar_lea.vmem %s143_s25, 32  ;;  %p257_p11 = scmp.lt.s32.totalorder %s143_s25, %s143_s25 }
  0x1e   :  { %v46_v12 = vld [vmem:[#allocation5 + $0x20] sm:$0xff]  ;;  %v45_v13 = vld [vmem:[#allocation5 + $0x18] sm:$0xff]  ;;  %v44_v14 = vld [vmem:[#allocation5 + $0x10] sm:$0xff]  ;;  %p253_p10 = scmp.ne.s32.totalorder %s143_s25, %s252_s26  ;;  %p258_p12 = scmp.lt.s32.totalorder %s252_s26, %s252_s26 }
  0x1f   :  { %v43_v15 = vld [vmem:[#allocation5 + $0x8] sm:$0xff]  ;;  %v42_v16 = vld [vmem:[#allocation5] sm:$0xff]  ;;  %v41_v17 = vld [vmem:[#allocation2] sm:$0x3] }
  0x20   :  { %173 = vmatpush3.xpose.msra.mxu0 %v56_v2  ;;  %v152_v18 = vld [vmem:[%s319_s2] ss:$0 sm:$0xff]  ;;  %p259_p13 = por %p258_p12, %p257_p11 }
  0x21   :  { %174 = vmatprep.subr.mxu0 %v282_v0 }
  0x22   :  { %p260_p0 = pnand %p259_p13, %p253_p10 }
  0x24   :  { %175 = vmatpush3.xpose.msra.mxu0 %v55_v3 }
  0x25   :  { %176 = vmatprep.subr.mxu0 %v282_v0 }
  0x28   :  { %177 = vmatpush3.xpose.msra.mxu0 %v54_v4 }
  0x29   :  { %178 = vmatprep.subr.mxu0 %v282_v0 }
  0x2c   :  { %179 = vmatpush3.xpose.msra.mxu0 %v53_v5 }
  0x2d   :  { %180 = vmatprep.subr.mxu0 %v282_v0 }
  0x30   :  { %181 = vmatpush3.xpose.msra.mxu0 %v52_v6 }
  0x31   :  { %182 = vmatprep.subr.mxu0 %v282_v0 }
  0x34   :  { %183 = vmatpush3.xpose.msra.mxu0 %v51_v7 }
  0x35   :  { %184 = vmatprep.subr.mxu0 %v282_v0 }
  0x38   :  { %185 = vmatpush3.xpose.msra.mxu0 %v50_v8 }
  0x39   :  { %186 = vmatprep.subr.mxu0 %v282_v0 }
  0x3c   :  { %187 = vmatpush3.xpose.msra.mxu0 %v49_v9 }
  0x3d   :  { %188 = vmatprep.subr.mxu0 %v282_v0 }
  0x40   :  { %189 = vmatpush3.xpose.msra.mxu0 %v48_v10 }
  0x41   :  { %190 = vmatprep.subr.mxu0 %v282_v0 }
  0x44   :  { %191 = vmatpush3.xpose.msra.mxu0 %v47_v11 }
  0x45   :  { %192 = vmatprep.subr.mxu0 %v282_v0 }
  0x48   :  { %193 = vmatpush3.xpose.msra.mxu0 %v46_v12 }
  0x49   :  { %194 = vmatprep.subr.mxu0 %v282_v0 }
  0x4c   :  { %195 = vmatpush3.xpose.msra.mxu0 %v45_v13 }
  0x4d   :  { %196 = vmatprep.subr.mxu0 %v282_v0 }
  0x50   :  { %197 = vmatpush3.xpose.msra.mxu0 %v44_v14 }
  0x51   :  { %198 = vmatprep.subr.mxu0 %v282_v0 }
  0x54   :  { %199 = vmatpush3.xpose.msra.mxu0 %v43_v15 }
  0x55   :  { %200 = vmatprep.subr.mxu0 %v282_v0 }
  0x58   :  { %201 = vmatpush3.xpose.msra.mxu0 %v42_v16 }
  0x5b   :  { %203 = vmatmul.mubr.f32.vlgmr.msra.gmra.mxu0 %v41_v17 }
 0x11b   :  { %v131_v19 = vpop.f32.mrf.mxu0 }
 0x11c   :  { %v132_v20 = vadd.f32 %v152_v18, %v131_v19 }
 0x11d   :  { %v204_v21 = vpop.f32.mrf.mxu0 }
 0x11e   :  { %135 = vst [vmem:[#allocation7] sm:$0x3] %v132_v20 }
 0x11f   :  { %263 = shalt.err (!%p260_p0)
}
 0x120   :  { %145 = dma.vmem_to_hbm [thread:$0]  %s143_s25, 32, %s320_s3, [#allocation4]  }
 0x121   :  { %276 = dma.done.wait [#allocation4], 32  }
 0x122   :  { %277 = vsyncadd [#allocation4], 4294967264 }
 0x123   :  { %149 = vsyncpa [#allocation3], 1 }
 0x124   :  { %150 = vsyncpa [#allocation6], 1 }
 0x125   :  { %151 = vsyncpa [#allocation4], 1 }

// kernel: tpu_custom_call.1
= control target key start
LH: loop header
LB: loop body
LE: loop exit
PB: predicated region body
PF: predicated region fallthrough
CT: control target
= control target key end

     0   :  { %8 = vsyncpa [#allocation3], 0  ;;  %s317_s0 = inlined_call_operand.hbm [shape: f32[2,128], index: 0, kind: input, shape index: {}]   ;;  %s318_s1 = inlined_call_operand.hbm [shape: f32[128,128], index: 1, kind: input, shape index: {}]   ;;  %s319_s2 = inlined_call_operand.vmem [shape: f32[1,128], index: 2, kind: input, shape index: {}]   ;;  %s320_s3 = inlined_call_operand.hbm [shape: f32[2,128], index: 3, kind: output, shape index: {}]  }
   0x1   :  { %9 = vsyncpa [#allocation6], 0 }
   0x2   :  { %10 = vsyncpa [#allocation4], 0  ;;  %s278_s12 = smov [#allocation2]   ;;  %s279_s14 = smov [#allocation5]  }
   0x3   :  { %s17_s13 = sshll.u32 %s278_s12, 4  ;;  %s26_s15 = sshll.u32 %s279_s14, 4  ;;  %s18_s13 = int_to_ptr.vmem [resolvable:$true] %s17_s13  ;;  %s27_s15 = int_to_ptr.vmem [resolvable:$true] %s26_s15 }
   0x4   :  { %s220_s16 = scalar_lea.vmem %s18_s13, 32  ;;  %p225_p1 = scmp.lt.s32.totalorder %s18_s13, %s18_s13 }
   0x5   :  { %p221_p0 = scmp.ne.s32.totalorder %s18_s13, %s220_s16  ;;  %p226_p2 = scmp.lt.s32.totalorder %s220_s16, %s220_s16 }
   0x7   :  { %p227_p3 = por %p226_p2, %p225_p1 }
   0x9   :  { %p228_p4 = pnand %p227_p3, %p221_p0 }
   0xb   :  { %231 = shalt.err (!%p228_p4)
}
   0xc   :  { %20 = dma.hbm_to_vmem [thread:$0]  %s317_s0, 32, %s18_s13, [#allocation3]  }
   0xd   :  { %s240_s19 = scalar_lea.vmem %s27_s15, 2048  ;;  %p245_p6 = scmp.lt.s32.totalorder %s27_s15, %s27_s15 }
   0xe   :  { %p241_p5 = scmp.ne.s32.totalorder %s27_s15, %s240_s19  ;;  %p246_p7 = scmp.lt.s32.totalorder %s240_s19, %s240_s19 }
  0x10   :  { %p247_p8 = por %p246_p7, %p245_p6 }
  0x12   :  { %p248_p9 = pnand %p247_p8, %p241_p5 }
  0x14   :  { %251 = shalt.err (!%p248_p9)
}
  0x15   :  { %s280_s20 = smov 128   ;;  %s281_s21 = smov 8  }
  0x16   :  { %32 = dma.hbm_to_vmem [thread:$0]  %s318_s1, 2048, %s27_s15, [#allocation6], %s280_s20, %s280_s20, %s281_s21  }
  0x17   :  { %272 = dma.done.wait [#allocation3], 32  }
  0x18   :  { %273 = vsyncadd [#allocation3], 4294967264 }
  0x19   :  { %274 = dma.done.wait [#allocation6], 2048  }
  0x1a   :  { %275 = vsyncadd [#allocation6], 4294965248  ;;  %v282_v0 = vmov 0.0   ;;  %vm283_vm0 = vmmov 0   ;;  %v57_v1 = vld [vmem:[#allocation5 + $0x78] sm:$0xff]  ;;  %v56_v2 = vld [vmem:[#allocation5 + $0x70] sm:$0xff] }
  0x1b   :  { %170 = vmatprep.subr.mxu0 %v282_v0  ;;  %202 = vmatprep.mubr.msk.f32.mxu0 %vm283_vm0, %v282_v0  ;;  %v55_v3 = vld [vmem:[#allocation5 + $0x68] sm:$0xff]  ;;  %v54_v4 = vld [vmem:[#allocation5 + $0x60] sm:$0xff]  ;;  %v53_v5 = vld [vmem:[#allocation5 + $0x58] sm:$0xff]  ;;  %s284_s24 = smov [#allocation7]  }
  0x1c   :  { %171 = vmatpush3.xpose.msra.mxu0 %v57_v1  ;;  %v52_v6 = vld [vmem:[#allocation5 + $0x50] sm:$0xff]  ;;  %v51_v7 = vld [vmem:[#allocation5 + $0x48] sm:$0xff]  ;;  %v50_v8 = vld [vmem:[#allocation5 + $0x40] sm:$0xff]  ;;  %s142_s25 = sshll.u32 %s284_s24, 4  ;;  %s143_s25 = int_to_ptr.vmem [resolvable:$true] %s142_s25 }
  0x1d   :  { %172 = vmatprep.subr.mxu0 %v282_v0  ;;  %v49_v9 = vld [vmem:[#allocation5 + $0x38] sm:$0xff]  ;;  %v48_v10 = vld [vmem:[#allocation5 + $0x30] sm:$0xff]  ;;  %v47_v11 = vld [vmem:[#allocation5 + $0x28] sm:$0xff]  ;;  %s252_s26 = scalar_lea.vmem %s143_s25, 32  ;;  %p257_p11 = scmp.lt.s32.totalorder %s143_s25, %s143_s25 }
  0x1e   :  { %v46_v12 = vld [vmem:[#allocation5 + $0x20] sm:$0xff]  ;;  %v45_v13 = vld [vmem:[#allocation5 + $0x18] sm:$0xff]  ;;  %v44_v14 = vld [vmem:[#allocation5 + $0x10] sm:$0xff]  ;;  %p253_p10 = scmp.ne.s32.totalorder %s143_s25, %s252_s26  ;;  %p258_p12 = scmp.lt.s32.totalorder %s252_s26, %s252_s26 }
  0x1f   :  { %v43_v15 = vld [vmem:[#allocation5 + $0x8] sm:$0xff]  ;;  %v42_v16 = vld [vmem:[#allocation5] sm:$0xff]  ;;  %v41_v17 = vld [vmem:[#allocation2] sm:$0x3] }
  0x20   :  { %173 = vmatpush3.xpose.msra.mxu0 %v56_v2  ;;  %v152_v18 = vld [vmem:[%s319_s2] ss:$0 sm:$0xff]  ;;  %p259_p13 = por %p258_p12, %p257_p11 }
  0x21   :  { %174 = vmatprep.subr.mxu0 %v282_v0 }
  0x22   :  { %p260_p0 = pnand %p259_p13, %p253_p10 }
  0x24   :  { %175 = vmatpush3.xpose.msra.mxu0 %v55_v3 }
  0x25   :  { %176 = vmatprep.subr.mxu0 %v282_v0 }
  0x28   :  { %177 = vmatpush3.xpose.msra.mxu0 %v54_v4 }
  0x29   :  { %178 = vmatprep.subr.mxu0 %v282_v0 }
  0x2c   :  { %179 = vmatpush3.xpose.msra.mxu0 %v53_v5 }
  0x2d   :  { %180 = vmatprep.subr.mxu0 %v282_v0 }
  0x30   :  { %181 = vmatpush3.xpose.msra.mxu0 %v52_v6 }
  0x31   :  { %182 = vmatprep.subr.mxu0 %v282_v0 }
  0x34   :  { %183 = vmatpush3.xpose.msra.mxu0 %v51_v7 }
  0x35   :  { %184 = vmatprep.subr.mxu0 %v282_v0 }
  0x38   :  { %185 = vmatpush3.xpose.msra.mxu0 %v50_v8 }
  0x39   :  { %186 = vmatprep.subr.mxu0 %v282_v0 }
  0x3c   :  { %187 = vmatpush3.xpose.msra.mxu0 %v49_v9 }
  0x3d   :  { %188 = vmatprep.subr.mxu0 %v282_v0 }
  0x40   :  { %189 = vmatpush3.xpose.msra.mxu0 %v48_v10 }
  0x41   :  { %190 = vmatprep.subr.mxu0 %v282_v0 }
  0x44   :  { %191 = vmatpush3.xpose.msra.mxu0 %v47_v11 }
  0x45   :  { %192 = vmatprep.subr.mxu0 %v282_v0 }
  0x48   :  { %193 = vmatpush3.xpose.msra.mxu0 %v46_v12 }
  0x49   :  { %194 = vmatprep.subr.mxu0 %v282_v0 }
  0x4c   :  { %195 = vmatpush3.xpose.msra.mxu0 %v45_v13 }
  0x4d   :  { %196 = vmatprep.subr.mxu0 %v282_v0 }
  0x50   :  { %197 = vmatpush3.xpose.msra.mxu0 %v44_v14 }
  0x51   :  { %198 = vmatprep.subr.mxu0 %v282_v0 }
  0x54   :  { %199 = vmatpush3.xpose.msra.mxu0 %v43_v15 }
  0x55   :  { %200 = vmatprep.subr.mxu0 %v282_v0 }
  0x58   :  { %201 = vmatpush3.xpose.msra.mxu0 %v42_v16 }
  0x5b   :  { %203 = vmatmul.mubr.f32.vlgmr.msra.gmra.mxu0 %v41_v17 }
 0x11b   :  { %v131_v19 = vpop.f32.mrf.mxu0 }
 0x11c   :  { %v132_v20 = vadd.f32 %v152_v18, %v131_v19 }
 0x11d   :  { %v204_v21 = vpop.f32.mrf.mxu0 }
 0x11e   :  { %135 = vst [vmem:[#allocation7] sm:$0x3] %v132_v20 }
 0x11f   :  { %263 = shalt.err (!%p260_p0)
}
 0x120   :  { %145 = dma.vmem_to_hbm [thread:$0]  %s143_s25, 32, %s320_s3, [#allocation4]  }
 0x121   :  { %276 = dma.done.wait [#allocation4], 32  }
 0x122   :  { %277 = vsyncadd [#allocation4], 4294967264 }
 0x123   :  { %149 = vsyncpa [#allocation3], 1 }
 0x124   :  { %150 = vsyncpa [#allocation6], 1 }
 0x125   :  { %151 = vsyncpa [#allocation4], 1 }

</bundles_post_ra>
